<compile_context>
chip_gen: v5e
topology: v5e:2x2
jax: 0.10.0
libtpu: 0.0.40
codegen_flags: <defaults>
</compile_context>

<pallas_src>
import functools

import jax
import jax.numpy as jnp
import numpy as np
from jax import lax
from jax.experimental import pallas as pl
from jax.experimental.pallas import tpu as pltpu


# ---------------------------------------------------------------------------
# Kernel
# ---------------------------------------------------------------------------
def _mbconv1d_kernel(x_ref, halo_ref, w1_ref, b1_ref, wd_ref, b2_ref,
                     w3_ref, b3_ref, o_ref, *, seq_len, tile_l, use_residual):
    """One (batch row, L tile) of the MBConv block, NCL layout (lane = L).

    x_ref    : (Cin, TL)   input tile (f32)
    halo_ref : (Cin, 2)    x columns just left / right of this tile
    w1_ref   : (H, Cin)    expand 1x1 weight, BN1 scale folded, bf16
    b1_ref   : (H, 1)      folded BN1 bias (f32)
    wd_ref   : (H, 3)      depthwise k=3 taps, BN2 scale folded (f32)
    b2_ref   : (H, 1)      folded BN2 bias (f32)
    w3_ref   : (Cout, H)   project 1x1 weight, BN3 scale folded, bf16
    b3_ref   : (Cout, 1)   folded BN3 bias (f32)
    o_ref    : (Cout, TL)  output tile (f32)
    """
    TL = tile_l
    j = pl.program_id(1)                                  # L-tile index

    x = x_ref[...]                                        # (Cin, TL) f32
    xb = x.astype(jnp.bfloat16)

    # ---- expand: 1x1 conv == (H, Cin) @ (Cin, TL), bias + SiLU (f32 acc) ---
    h = jnp.dot(w1_ref[...], xb, preferred_element_type=jnp.float32)
    h = h + b1_ref[...]
    h = h * jax.nn.sigmoid(h)                             # SiLU

    # ---- expand the two halo columns (x[:, j*TL-1], x[:, (j+1)*TL]) --------
    hb = halo_ref[...].astype(jnp.bfloat16)               # (Cin, 2)
    hh = jnp.dot(w1_ref[...], hb, preferred_element_type=jnp.float32)
    hh = hh + b1_ref[...]
    hh = hh * jax.nn.sigmoid(hh)                          # (H, 2)
    valid_l = j > 0                                       # seq start -> conv zero pad
    valid_r = (j + 1) * TL < seq_len                      # seq end   -> conv zero pad
    h_left = jnp.where(valid_l, hh[:, 0:1], 0.0)          # (H, 1)
    h_right = jnp.where(valid_r, hh[:, 1:2], 0.0)         # (H, 1)

    # (1, TL) lane iota; broadcasts across the H sublanes in the selects below.
    lane = lax.broadcasted_iota(jnp.int32, (1, TL), 1)

    # Zero h at padded columns (only emitted when the last tile is partial),
    # so the "next" tap of the last real column sees the true conv zero pad.
    if seq_len % TL != 0:
        h = jnp.where(lane < seq_len - j * TL, h, 0.0)

    # ---- depthwise conv k=3, pad=1, stride=1 via lane rolls + halo patch ---
    prev = pltpu.roll(h, shift=1, axis=1)                 # prev[:, l] = h[:, l-1]
    prev = jnp.where(lane == 0, h_left, prev)
    nxt = pltpu.roll(h, shift=TL - 1, axis=1)             # == shift -1 (mod TL)
    nxt = jnp.where(lane == TL - 1, h_right, nxt)
    wd = wd_ref[...]                                      # (H, 3)
    d = prev * wd[:, 0:1] + h * wd[:, 1:2] + nxt * wd[:, 2:3]
    d = d + b2_ref[...]
    d = d * jax.nn.sigmoid(d)                             # SiLU

    # ---- project: 1x1 conv == (Cout, H) @ (H, TL), bias (no activation) ----
    y = jnp.dot(w3_ref[...], d.astype(jnp.bfloat16),
                preferred_element_type=jnp.float32)
    y = y + b3_ref[...]

    if use_residual:
        y = y + x                                         # f32 residual
    o_ref[...] = y.astype(o_ref.dtype)


# ---------------------------------------------------------------------------
# Wrapper
# ---------------------------------------------------------------------------
def _vmem_capacity_bytes():
    try:
        cap = int(getattr(pltpu.get_tpu_info(), "vmem_capacity_bytes", 0))
        if cap > 0:
            return cap
    except Exception:
        pass
    return 64 * 1024 * 1024        # conservative default (v7x per-TC VMEM)


def _pick_tile_l(L, H, vmem_limit):
    """Largest lane-aligned TL whose ~8 live (H, TL) f32 intermediates stay
    well under the scoped-VMEM budget (leaves room for double-buffered x/out
    blocks and the resident weights)."""
    budget = vmem_limit // 3
    tl = budget // (8 * H * 4)
    tl = max(128, min(2048, (tl // 128) * 128))
    return L if L <= tl else tl


def mbconv1d_pallas(x_ncl, params, *, use_residual, tile_l=None):
    """x_ncl: (B, Cin, L) float32, PyTorch NCL layout. Returns (B, Cout, L)."""
    B, Cin, L = x_ncl.shape
    w1p, b1p, wdp, b2p, w3p, b3p = params
    H = w1p.shape[0]
    Cout = w3p.shape[0]

    vmem_cap = _vmem_capacity_bytes()
    # ~48 MiB on v7x (64 MiB physical), ~96 MiB on v5e/v6e (128 MiB physical).
    vmem_limit = min(vmem_cap * 3 // 4, 100 * 1024 * 1024)

    TL = tile_l if tile_l is not None else _pick_tile_l(L, H, vmem_limit)
    n_t = (L + TL - 1) // TL
    Lp = n_t * TL

    x_p = x_ncl if Lp == L else jnp.pad(x_ncl, ((0, 0), (0, 0), (0, Lp - L)))

    # Halo side input: halo[b, j, :, 0] = x[b, :, j*TL-1], halo[b, j, :, 1] =
    # x[b, :, (j+1)*TL] (values at out-of-range positions are masked in-kernel).
    xl = jnp.pad(x_p, ((0, 0), (0, 0), (1, 0)))[:, :, :-1]   # shift right by 1
    xr = jnp.pad(x_p, ((0, 0), (0, 0), (0, 1)))[:, :, 1:]    # shift left by 1
    left = xl[:, :, ::TL]                                    # (B, Cin, n_t)
    right = xr[:, :, TL - 1::TL]                             # (B, Cin, n_t)
    halo = jnp.stack([left, right], axis=-1).transpose(0, 2, 1, 3)  # (B,n_t,Cin,2)

    kernel = functools.partial(_mbconv1d_kernel, seq_len=L, tile_l=TL,
                               use_residual=use_residual)

    def _const(b, j):            # weights / biases stay resident across steps
        return (0, 0)

    out = pl.pallas_call(
        kernel,
        out_shape=jax.ShapeDtypeStruct((B, Cout, Lp), jnp.float32),
        grid_spec=pltpu.PrefetchScalarGridSpec(
            num_scalar_prefetch=0,
            grid=(B, n_t),
            in_specs=[
                pl.BlockSpec((None, Cin, TL), lambda b, j: (b, 0, j)),        # x tile
                pl.BlockSpec((None, None, Cin, 2), lambda b, j: (b, j, 0, 0)),  # halo
                pl.BlockSpec((H, Cin), _const),                               # w1' (bf16)
                pl.BlockSpec((H, 1), _const),                                 # b1
                pl.BlockSpec((H, 3), _const),                                 # wd'
                pl.BlockSpec((H, 1), _const),                                 # b2
                pl.BlockSpec((Cout, H), _const),                              # w3' (bf16)
                pl.BlockSpec((Cout, 1), _const),                              # b3
            ],
            out_specs=pl.BlockSpec((None, Cout, TL), lambda b, j: (b, 0, j)),
        ),
        compiler_params=pltpu.CompilerParams(
            dimension_semantics=("parallel", "parallel"),   # B and L tiles
            vmem_limit_bytes=int(vmem_limit),
        ),
    )(x_p, halo, w1p, b1p, wdp, b2p, w3p, b3p)

    return out if Lp == L else out[:, :, :L]


# ---------------------------------------------------------------------------
# Deterministic parameter construction + pure-JAX (lax.conv) reference.
# ---------------------------------------------------------------------------
def make_params(key, in_channels, out_channels, expand_ratio):
    hidden = int(in_channels * expand_ratio)
    ks = jax.random.split(key, 12)
    eps = 1e-5

    def bn(kg, kb, km, kv, c):
        gamma = 1.0 + 0.1 * jax.random.normal(kg, (c,), jnp.float32)
        beta = 0.1 * jax.random.normal(kb, (c,), jnp.float32)
        mean = 0.1 * jax.random.normal(km, (c,), jnp.float32)
        var = 0.5 + jnp.abs(jax.random.normal(kv, (c,), jnp.float32))
        scale = gamma * lax.rsqrt(var + eps)
        bias = beta - mean * scale
        return gamma, beta, mean, var, scale, bias

    # PyTorch-shaped conv weights (bias=False convs, as in the module spec)
    w1_t = 0.2 * jax.random.normal(ks[0], (hidden, in_channels, 1), jnp.float32)
    wd_t = 0.2 * jax.random.normal(ks[1], (hidden, 1, 3), jnp.float32)
    w3_t = 0.2 * jax.random.normal(ks[2], (out_channels, hidden, 1), jnp.float32)

    bn1 = bn(ks[3], ks[4], ks[5], ks[6], hidden)
    bn2 = bn(ks[7], ks[8], ks[9], ks[10], hidden)
    bn3 = bn(ks[11], ks[3], ks[5], ks[7], out_channels)   # key reuse, deterministic

    torch_params = dict(w1=w1_t, wd=wd_t, w3=w3_t, bn1=bn1, bn2=bn2, bn3=bn3)

    # Kernel-side params: BN scales folded into weights; 1x1 weights in bf16
    # (MXU-native on v5e/v6e/v7x), biases and depthwise taps kept in f32.
    s1, b1 = bn1[4], bn1[5]
    s2, b2 = bn2[4], bn2[5]
    s3, b3 = bn3[4], bn3[5]
    kparams = (
        (s1[:, None] * w1_t[:, :, 0]).astype(jnp.bfloat16),   # (H, Cin)
        b1[:, None].astype(jnp.float32),                      # (H, 1)
        (s2[:, None] * wd_t[:, 0, :]).astype(jnp.float32),    # (H, 3)
        b2[:, None].astype(jnp.float32),                      # (H, 1)
        (s3[:, None] * w3_t[:, :, 0]).astype(jnp.bfloat16),   # (Cout, H)
        b3[:, None].astype(jnp.float32),                      # (Cout, 1)
    )
    return torch_params, kparams


def reference_forward(x_ncl, tp, *, use_residual):
    """Pure-JAX mirror of the PyTorch module (eval-mode BN), NCL layout, f32."""
    dn = ("NCH", "OIH", "NCH")
    eps = 1e-5

    def apply_bn(h, bn):
        gamma, beta, mean, var, _, _ = bn
        return (h - mean[None, :, None]) * lax.rsqrt(var + eps)[None, :, None] \
            * gamma[None, :, None] + beta[None, :, None]

    h = lax.conv_general_dilated(x_ncl, tp["w1"], (1,), "VALID", dimension_numbers=dn)
    h = apply_bn(h, tp["bn1"])
    h = h * jax.nn.sigmoid(h)

    H = tp["wd"].shape[0]
    h = lax.conv_general_dilated(h, tp["wd"], (1,), [(1, 1)],
                                 dimension_numbers=dn, feature_group_count=H)
    h = apply_bn(h, tp["bn2"])
    h = h * jax.nn.sigmoid(h)

    h = lax.conv_general_dilated(h, tp["w3"], (1,), "VALID", dimension_numbers=dn)
    h = apply_bn(h, tp["bn3"])
    return x_ncl + h if use_residual else h


if __name__ == "__main__":
    B, C_in, C_out, expand_ratio, stride = 2, 4, 4, 6, 1
    use_residual = (C_in == C_out) and (stride == 1)

    key = jax.random.PRNGKey(0)
    kx1, kx2, kp = jax.random.split(key, 3)
    torch_params, kernel_params = make_params(kp, C_in, C_out, expand_ratio)

    # Case 1: small harness shape (single L tile, no halo / no tail mask).
    L1 = 16
    x1 = jax.random.normal(kx1, (B, C_in, L1), jnp.float32)
    out1 = jax.block_until_ready(
        mbconv1d_pallas(x1, kernel_params, use_residual=use_residual))
    ref1 = jax.block_until_ready(
        reference_forward(x1, torch_params, use_residual=use_residual))
    np.testing.assert_allclose(np.asarray(out1), np.asarray(ref1),
                               rtol=2e-2, atol=2e-2)

    # Case 2: exercise the L-tiling path (halo columns + partial tail tile).
    L2 = 300
    x2 = jax.random.normal(kx2, (B, C_in, L2), jnp.float32)
    out2 = jax.block_until_ready(
        mbconv1d_pallas(x2, kernel_params, use_residual=use_residual, tile_l=128))
    ref2 = jax.block_until_ready(
        reference_forward(x2, torch_params, use_residual=use_residual))
    np.testing.assert_allclose(np.asarray(out2), np.asarray(ref2),
                               rtol=2e-2, atol=2e-2)

    print("KERNEL_OK")
</pallas_src>

<mosaic_0001>
module attributes {stable_mosaic.version = 11 : i64} {
  func.func @_mbconv1d_kernel(%arg0: i32, %arg1: i32, %arg2: memref<1x4x16xf32, #tpu.memory_space<vmem>>, %arg3: memref<1x1x4x2xf32, #tpu.memory_space<vmem>>, %arg4: memref<24x4xbf16, #tpu.memory_space<vmem>>, %arg5: memref<24x1xf32, #tpu.memory_space<vmem>>, %arg6: memref<24x3xf32, #tpu.memory_space<vmem>>, %arg7: memref<24x1xf32, #tpu.memory_space<vmem>>, %arg8: memref<4x24xbf16, #tpu.memory_space<vmem>>, %arg9: memref<4x1xf32, #tpu.memory_space<vmem>>, %arg10: memref<1x4x16xf32, #tpu.memory_space<vmem>>) attributes {dimension_semantics = [#tpu.dimension_semantics<parallel>, #tpu.dimension_semantics<parallel>], iteration_bounds = array<i64: 2, 1>, scalar_prefetch = 0 : i64, scratch_operands = 0 : i64, tpu.core_type = #tpu.core_type<tc>, window_params = [{transform_indices = @transform_0, window_bounds = array<i64: 1, 4, 16>}, {transform_indices = @transform_1, window_bounds = array<i64: 1, 1, 4, 2>}, {pipeline_mode = #tpu.pipeline_mode<synchronous>, transform_indices = @transform_2, window_bounds = array<i64: 24, 4>}, {pipeline_mode = #tpu.pipeline_mode<synchronous>, transform_indices = @transform_3, window_bounds = array<i64: 24, 1>}, {pipeline_mode = #tpu.pipeline_mode<synchronous>, transform_indices = @transform_4, window_bounds = array<i64: 24, 3>}, {pipeline_mode = #tpu.pipeline_mode<synchronous>, transform_indices = @transform_5, window_bounds = array<i64: 24, 1>}, {pipeline_mode = #tpu.pipeline_mode<synchronous>, transform_indices = @transform_6, window_bounds = array<i64: 4, 24>}, {pipeline_mode = #tpu.pipeline_mode<synchronous>, transform_indices = @transform_7, window_bounds = array<i64: 4, 1>}, {transform_indices = @transform_8, window_bounds = array<i64: 1, 4, 16>}]} {
    %c0 = arith.constant 0 : index
    %c0_0 = arith.constant 0 : index
    %c0_1 = arith.constant 0 : index
    %0 = vector.load %arg2[%c0, %c0_0, %c0_1] : memref<1x4x16xf32, #tpu.memory_space<vmem>>, vector<1x4x16xf32>
    %1 = vector.shape_cast %0 : vector<1x4x16xf32> to vector<4x16xf32>
    %2 = arith.truncf %1 : vector<4x16xf32> to vector<4x16xbf16>
    %c0_2 = arith.constant 0 : index
    %c0_3 = arith.constant 0 : index
    %3 = vector.load %arg4[%c0_2, %c0_3] : memref<24x4xbf16, #tpu.memory_space<vmem>>, vector<24x4xbf16>
    %cst = arith.constant dense<0.000000e+00> : vector<24x16xf32>
    %4 = tpu.matmul %3, %2, %cst {dimension_numbers = #tpu.dot_dimension_numbers<[1], [0], [0], [1], [0, 0, 1, 1], [], []>} : vector<24x4xbf16>, vector<4x16xbf16>, vector<24x16xf32> -> vector<24x16xf32>
    %c0_4 = arith.constant 0 : index
    %c0_5 = arith.constant 0 : index
    %5 = vector.load %arg5[%c0_4, %c0_5] : memref<24x1xf32, #tpu.memory_space<vmem>>, vector<24x1xf32>
    %6 = vector.broadcast %5 : vector<24x1xf32> to vector<24x16xf32>
    %7 = arith.addf %4, %6 : vector<24x16xf32>
    %8 = arith.negf %7 : vector<24x16xf32>
    %9 = math.exp %8 : vector<24x16xf32>
    %cst_6 = arith.constant 1.000000e+00 : f32
    %10 = vector.broadcast %cst_6 : f32 to vector<24x16xf32>
    %11 = arith.addf %10, %9 : vector<24x16xf32>
    %12 = arith.divf %10, %11 : vector<24x16xf32>
    %13 = arith.mulf %7, %12 : vector<24x16xf32>
    %c0_7 = arith.constant 0 : index
    %c0_8 = arith.constant 0 : index
    %c0_9 = arith.constant 0 : index
    %c0_10 = arith.constant 0 : index
    %14 = vector.load %arg3[%c0_7, %c0_8, %c0_9, %c0_10] : memref<1x1x4x2xf32, #tpu.memory_space<vmem>>, vector<1x1x4x2xf32>
    %15 = vector.shape_cast %14 : vector<1x1x4x2xf32> to vector<4x2xf32>
    %16 = arith.truncf %15 : vector<4x2xf32> to vector<4x2xbf16>
    %c0_11 = arith.constant 0 : index
    %c0_12 = arith.constant 0 : index
    %17 = vector.load %arg4[%c0_11, %c0_12] : memref<24x4xbf16, #tpu.memory_space<vmem>>, vector<24x4xbf16>
    %cst_13 = arith.constant dense<0.000000e+00> : vector<24x2xf32>
    %18 = tpu.matmul %17, %16, %cst_13 {dimension_numbers = #tpu.dot_dimension_numbers<[1], [0], [0], [1], [0, 0, 1, 1], [], []>} : vector<24x4xbf16>, vector<4x2xbf16>, vector<24x2xf32> -> vector<24x2xf32>
    %c0_14 = arith.constant 0 : index
    %c0_15 = arith.constant 0 : index
    %19 = vector.load %arg5[%c0_14, %c0_15] : memref<24x1xf32, #tpu.memory_space<vmem>>, vector<24x1xf32>
    %20 = vector.broadcast %19 : vector<24x1xf32> to vector<24x2xf32>
    %21 = arith.addf %18, %20 : vector<24x2xf32>
    %22 = arith.negf %21 : vector<24x2xf32>
    %23 = math.exp %22 : vector<24x2xf32>
    %cst_16 = arith.constant 1.000000e+00 : f32
    %24 = vector.broadcast %cst_16 : f32 to vector<24x2xf32>
    %25 = arith.addf %24, %23 : vector<24x2xf32>
    %26 = arith.divf %24, %25 : vector<24x2xf32>
    %27 = arith.mulf %21, %26 : vector<24x2xf32>
    %c0_i32 = arith.constant 0 : i32
    %28 = arith.cmpi sgt, %arg1, %c0_i32 : i32
    %c1_i32 = arith.constant 1 : i32
    %29 = arith.addi %arg1, %c1_i32 : i32
    %c16_i32 = arith.constant 16 : i32
    %30 = arith.muli %29, %c16_i32 : i32
    %c16_i32_17 = arith.constant 16 : i32
    %31 = arith.cmpi slt, %30, %c16_i32_17 : i32
    %32 = vector.extract_strided_slice %27 {offsets = [0, 0], sizes = [24, 1], strides = [1, 1]} : vector<24x2xf32> to vector<24x1xf32>
    %cst_18 = arith.constant 0.000000e+00 : f32
    %33 = vector.broadcast %cst_18 : f32 to vector<24x1xf32>
    %34 = arith.select %28, %32, %33 : vector<24x1xf32>
    %35 = vector.extract_strided_slice %27 {offsets = [0, 1], sizes = [24, 1], strides = [1, 1]} : vector<24x2xf32> to vector<24x1xf32>
    %cst_19 = arith.constant 0.000000e+00 : f32
    %36 = vector.broadcast %cst_19 : f32 to vector<24x1xf32>
    %37 = arith.select %31, %35, %36 : vector<24x1xf32>
    %38 = tpu.iota {dimensions = array<i32: 1>} : vector<1x16xi32>
    %c1_i32_20 = arith.constant 1 : i32
    %39 = tpu.dynamic_rotate %13 by %c1_i32_20 dim 1 : vector<24x16xf32>, i32 -> vector<24x16xf32>
    %c0_i32_21 = arith.constant 0 : i32
    %40 = vector.broadcast %c0_i32_21 : i32 to vector<1x16xi32>
    %41 = arith.cmpi eq, %38, %40 : vector<1x16xi32>
    %42 = vector.shape_cast %41 : vector<1x16xi1> to vector<1x16xi1>
    %43 = vector.broadcast %42 : vector<1x16xi1> to vector<24x16xi1>
    %44 = vector.shape_cast %34 : vector<24x1xf32> to vector<24x1xf32>
    %45 = vector.broadcast %44 : vector<24x1xf32> to vector<24x16xf32>
    %46 = arith.select %43, %45, %39 : vector<24x16xi1>, vector<24x16xf32>
    %c15_i32 = arith.constant 15 : i32
    %47 = tpu.dynamic_rotate %13 by %c15_i32 dim 1 : vector<24x16xf32>, i32 -> vector<24x16xf32>
    %c15_i32_22 = arith.constant 15 : i32
    %48 = vector.broadcast %c15_i32_22 : i32 to vector<1x16xi32>
    %49 = arith.cmpi eq, %38, %48 : vector<1x16xi32>
    %50 = vector.shape_cast %49 : vector<1x16xi1> to vector<1x16xi1>
    %51 = vector.broadcast %50 : vector<1x16xi1> to vector<24x16xi1>
    %52 = vector.shape_cast %37 : vector<24x1xf32> to vector<24x1xf32>
    %53 = vector.broadcast %52 : vector<24x1xf32> to vector<24x16xf32>
    %54 = arith.select %51, %53, %47 : vector<24x16xi1>, vector<24x16xf32>
    %c0_23 = arith.constant 0 : index
    %c0_24 = arith.constant 0 : index
    %55 = vector.load %arg6[%c0_23, %c0_24] : memref<24x3xf32, #tpu.memory_space<vmem>>, vector<24x3xf32>
    %56 = vector.extract_strided_slice %55 {offsets = [0, 0], sizes = [24, 1], strides = [1, 1]} : vector<24x3xf32> to vector<24x1xf32>
    %57 = vector.broadcast %56 : vector<24x1xf32> to vector<24x16xf32>
    %58 = arith.mulf %46, %57 : vector<24x16xf32>
    %59 = vector.extract_strided_slice %55 {offsets = [0, 1], sizes = [24, 1], strides = [1, 1]} : vector<24x3xf32> to vector<24x1xf32>
    %60 = vector.broadcast %59 : vector<24x1xf32> to vector<24x16xf32>
    %61 = arith.mulf %13, %60 : vector<24x16xf32>
    %62 = arith.addf %58, %61 : vector<24x16xf32>
    %63 = vector.extract_strided_slice %55 {offsets = [0, 2], sizes = [24, 1], strides = [1, 1]} : vector<24x3xf32> to vector<24x1xf32>
    %64 = vector.broadcast %63 : vector<24x1xf32> to vector<24x16xf32>
    %65 = arith.mulf %54, %64 : vector<24x16xf32>
    %66 = arith.addf %62, %65 : vector<24x16xf32>
    %c0_25 = arith.constant 0 : index
    %c0_26 = arith.constant 0 : index
    %67 = vector.load %arg7[%c0_25, %c0_26] : memref<24x1xf32, #tpu.memory_space<vmem>>, vector<24x1xf32>
    %68 = vector.broadcast %67 : vector<24x1xf32> to vector<24x16xf32>
    %69 = arith.addf %66, %68 : vector<24x16xf32>
    %70 = arith.negf %69 : vector<24x16xf32>
    %71 = math.exp %70 : vector<24x16xf32>
    %cst_27 = arith.constant 1.000000e+00 : f32
    %72 = vector.broadcast %cst_27 : f32 to vector<24x16xf32>
    %73 = arith.addf %72, %71 : vector<24x16xf32>
    %74 = arith.divf %72, %73 : vector<24x16xf32>
    %75 = arith.mulf %69, %74 : vector<24x16xf32>
    %c0_28 = arith.constant 0 : index
    %c0_29 = arith.constant 0 : index
    %76 = vector.load %arg8[%c0_28, %c0_29] : memref<4x24xbf16, #tpu.memory_space<vmem>>, vector<4x24xbf16>
    %77 = arith.truncf %75 : vector<24x16xf32> to vector<24x16xbf16>
    %cst_30 = arith.constant dense<0.000000e+00> : vector<4x16xf32>
    %78 = tpu.matmul %76, %77, %cst_30 {dimension_numbers = #tpu.dot_dimension_numbers<[1], [0], [0], [1], [0, 0, 1, 1], [], []>} : vector<4x24xbf16>, vector<24x16xbf16>, vector<4x16xf32> -> vector<4x16xf32>
    %c0_31 = arith.constant 0 : index
    %c0_32 = arith.constant 0 : index
    %79 = vector.load %arg9[%c0_31, %c0_32] : memref<4x1xf32, #tpu.memory_space<vmem>>, vector<4x1xf32>
    %80 = vector.broadcast %79 : vector<4x1xf32> to vector<4x16xf32>
    %81 = arith.addf %78, %80 : vector<4x16xf32>
    %82 = arith.addf %81, %1 : vector<4x16xf32>
    %c0_33 = arith.constant 0 : index
    %c0_34 = arith.constant 0 : index
    %c0_35 = arith.constant 0 : index
    %83 = vector.load %arg10[%c0_33, %c0_34, %c0_35] : memref<1x4x16xf32, #tpu.memory_space<vmem>>, vector<1x4x16xf32>
    %84 = vector.shape_cast %83 : vector<1x4x16xf32> to vector<4x16xf32>
    %85 = vector.shape_cast %82 : vector<4x16xf32> to vector<1x4x16xf32>
    tpu.vector_store %arg10[%c0_33, %c0_34, %c0_35], %85 {strides = array<i32>} : memref<1x4x16xf32, #tpu.memory_space<vmem>>, vector<1x4x16xf32>,
    return
  }
  func.func @transform_0(%arg0: i32, %arg1: i32) -> (i32, i32, i32) {
    %c0_i32 = arith.constant 0 : i32
    %c0_i32_0 = arith.constant 0 : i32
    return %arg0, %c0_i32, %arg1 : i32, i32, i32
  }
  func.func @transform_1(%arg0: i32, %arg1: i32) -> (i32, i32, i32, i32) {
    %c0_i32 = arith.constant 0 : i32
    %c0_i32_0 = arith.constant 0 : i32
    %c0_i32_1 = arith.constant 0 : i32
    return %arg0, %arg1, %c0_i32, %c0_i32_0 : i32, i32, i32, i32
  }
  func.func @transform_2(%arg0: i32, %arg1: i32) -> (i32, i32) {
    %c0_i32 = arith.constant 0 : i32
    %c0_i32_0 = arith.constant 0 : i32
    %c0_i32_1 = arith.constant 0 : i32
    return %c0_i32, %c0_i32_0 : i32, i32
  }
  func.func @transform_3(%arg0: i32, %arg1: i32) -> (i32, i32) {
    %c0_i32 = arith.constant 0 : i32
    %c0_i32_0 = arith.constant 0 : i32
    %c0_i32_1 = arith.constant 0 : i32
    return %c0_i32, %c0_i32_0 : i32, i32
  }
  func.func @transform_4(%arg0: i32, %arg1: i32) -> (i32, i32) {
    %c0_i32 = arith.constant 0 : i32
    %c0_i32_0 = arith.constant 0 : i32
    %c0_i32_1 = arith.constant 0 : i32
    return %c0_i32, %c0_i32_0 : i32, i32
  }
  func.func @transform_5(%arg0: i32, %arg1: i32) -> (i32, i32) {
    %c0_i32 = arith.constant 0 : i32
    %c0_i32_0 = arith.constant 0 : i32
    %c0_i32_1 = arith.constant 0 : i32
    return %c0_i32, %c0_i32_0 : i32, i32
  }
  func.func @transform_6(%arg0: i32, %arg1: i32) -> (i32, i32) {
    %c0_i32 = arith.constant 0 : i32
    %c0_i32_0 = arith.constant 0 : i32
    %c0_i32_1 = arith.constant 0 : i32
    return %c0_i32, %c0_i32_0 : i32, i32
  }
  func.func @transform_7(%arg0: i32, %arg1: i32) -> (i32, i32) {
    %c0_i32 = arith.constant 0 : i32
    %c0_i32_0 = arith.constant 0 : i32
    %c0_i32_1 = arith.constant 0 : i32
    return %c0_i32, %c0_i32_0 : i32, i32
  }
  func.func @transform_8(%arg0: i32, %arg1: i32) -> (i32, i32, i32) {
    %c0_i32 = arith.constant 0 : i32
    %c0_i32_0 = arith.constant 0 : i32
    return %arg0, %c0_i32, %arg1 : i32, i32, i32
  }
}

</mosaic_0001>

<bundles_post_ra>
// kernel: tpu_custom_call.1
= control target key start
LH: loop header
LB: loop body
LE: loop exit
PB: predicated region body
PF: predicated region fallthrough
CT: control target
= control target key end

     0   :  { %13 = vsyncpa [#allocation3], 0  ;;  %s1434_s0 = inlined_call_operand.vmem [shape: f32[2,4,16], index: 0, kind: input, shape index: {}]   ;;  %s1435_s1 = inlined_call_operand.vmem [shape: f32[2,1,4,2], index: 1, kind: input, shape index: {}]   ;;  %s1436_s2 = inlined_call_operand.vmem [shape: bf16[24,4], index: 2, kind: input, shape index: {}]   ;;  %s1437_s3 = inlined_call_operand.vmem [shape: f32[24,1], index: 3, kind: input, shape index: {}]   ;;  %s1438_s4 = inlined_call_operand.vmem [shape: f32[24,3], index: 4, kind: input, shape index: {}]   ;;  %s1439_s5 = inlined_call_operand.vmem [shape: f32[24,1], index: 5, kind: input, shape index: {}]   ;;  %s1440_s6 = inlined_call_operand.vmem [shape: bf16[4,24], index: 6, kind: input, shape index: {}]   ;;  %s1441_s7 = inlined_call_operand.vmem [shape: f32[4,1], index: 7, kind: input, shape index: {}]   ;;  %s1442_s8 = inlined_call_operand.hbm [shape: f32[2,4,16], index: 8, kind: output, shape index: {}]  }
   0x1   :  { %15 = vsyncpa [#allocation3 + $0x1], 0  ;;  %s1206_s27 = smov 0   ;;  %s1208_s28 = smov 0  }
   0x2   :  { %s1210_s29 = smov 0   ;;  %s1212_s30 = smov 0  }
   0x3   :  { %s1214_s9 = smov 0   ;;  %s1216_s10 = smov 0  }
   0x4 LB: > { %s932_s11 = sadd.s32 4294967295, %s1152_s10   ;;  %s933_s12 = sadd.s32 4294967294, %s1152_s10   ;;  %s1152_s10 = sphi %s1216_s10, %s21_s10   ;;  %s1148_s9 = sphi %s1214_s9, %s1449_s9   ;;  %s1144_s30 = sphi %s1212_s30, %s1448_s30   ;;  %s1140_s29 = sphi %s1210_s29, %s1447_s29   ;;  %s1136_s28 = sphi %s1208_s28, %s1446_s28   ;;  %s1132_s27 = sphi %s1206_s27, %s1445_s27  }
   0x5   : > { %s33_s13 = sadd.s32 1, %s1148_s9  ;;  %s224_s14 = sadd.s32 1, %s1140_s29 }
   0x6   : > { %p35_p0 = scmp.ge.s32.totalorder %s33_s13, 2  ;;  %p234_p1 = scmp.ne.s32.totalorder %s1140_s29, %s1136_s28 }
   0x7   : > { %p235_p2 = scmp.eq.s32.totalorder %s932_s11, 1  ;;  %p240_p3 = scmp.ne.s32.totalorder %s1136_s28, %s1132_s27 }
   0x8   : > { %s1451_s13 = smov (%p35_p0, %s33_s13), 0  ;;  %p241_p5 = scmp.eq.s32.totalorder %s933_s12, 1 }
   0x9   : > { %p1246_p4 = por %p235_p2, %p234_p1  ;;  %s219_s16 = ssub.s32 %s1148_s9, %s1451_s13 }
   0xa   : > { %p936_p6 = scmp.ge.s32.totalorder %s1152_s10, 1  ;;  %p222_p7 = scmp.eq.s32.totalorder %s219_s16, 0 }
   0xb   : > { %p1253_p8 = por %p241_p5, %p240_p3  ;;  %p297_p9 = scmp.lt.s32.totalorder %s1152_s10, 3 }
   0xc   : > { %s1259_s18 = scalar_select %p222_p7, %s1140_s29, %s224_s14  }
   0xd   : > { %p298_p10 = pnand %p936_p6, %p297_p9 }
   0xe   : > { %p340_p11 = scmp.lt.s32.totalorder (!%p298_p10), %s1144_s30, 1  ;;  %s1156_s25 = smov (!%p298_p10), 16  }
   0xf   : > { %301 = sbr.rel (%p298_p10) target bundleno = 735 (0x2df), region = 52  ;;  %s1159_s21 = smov (!%p298_p10), 113  }
  0x10   : > { %s1160_s22 = smov (!%p298_p10), 127  }
  0x14   : > { %v362_v0 = vld [vmem:[%s1437_s3 + $0x10] sm:$0xff]  ;;  %v361_v1 = vld [vmem:[%s1437_s3 + $0x8] sm:$0xff]  ;;  %s1269_s23 = scalar_select %p340_p11, %s1144_s30, 1  ;;  %v1154_v3 = vmov 0   ;;  %vm393_vm0 = vcmask 1041408   ;;  %v360_v7 = vld [vmem:[%s1437_s3] sm:$0xff] }
  0x15   : > { %v359_v2 = vld [vmem:[%s1436_s2 + $0x8] sm:$0xf]  ;;  %1026 = vset.pattern.permute.xlu0 %v1154_v3  ;;  %1027 = vset.pattern.permute.xlu1 %v1154_v3  ;;  %v1294_v9 = vld [vmem:[%s1436_s2] sm:$0xff]  ;;  %vm386_vm1 = vcmask 31744   ;;  %v1155_v11 = vmov 1   ;;  %v1306_v12 = vld [vmem:[%s1438_s4 + $0x10] sm:$0xff] }
  0x16   : > { %375 = vperm.xlu0 %1026, %v362_v0   ;;  %370 = vperm.xlu1 %1027, %v361_v1   ;;  %s938_s26 = sshll.u32 %s1269_s23, 2  ;;  %v383_v4 = vunpack.c.l.b16 %v359_v2  ;;  %v1157_v1 = vmov 0.0   ;;  %vm576_vm14 = vcmask 1047680  }
  0x17   : > { %1028 = vset.pattern.permute.xlu2 %v1154_v3  ;;  %s346_s14 = scalar_lea.vmem %s1434_s0, %s938_s26 }
  0x18   : > { %v1283_v5 = vld [vmem:[%s346_s14] sm:$0xf]  ;;  %v1296_v10 = vpack.c.b16 %v383_v4, %v383_v4 }
  0x19   : > { %v356_v6 = vpack.c.bf16 %v1283_v5, %v1283_v5 }
  0x1b   : > { %v395_v8 = vsel %vm393_vm0, %v356_v6, 0 }
  0x1c   : > { %404 = vmatpush.bf16.msra.mxu0 %v395_v8  ;;  %963 = vmatpush.bf16.msra.mxu3 %v395_v8  ;;  %v658_v8 = vld [vmem:[%s1438_s4] sm:$0xff] }
  0x1e   : > { %365 = vperm.xlu0 %1026, %v360_v7   ;;  %1036 = vset.pattern.permute.xlu1 %v1155_v11 }
  0x1f   : > { %944 = vmatmul.msk.bf16.vlgmr.msra.gmra.mxu0 %vm386_vm1, %v1294_v9  ;;  %945 = vmatmul.msk.bf16.vlgmr.msra.gmra.mxu3 %vm386_vm1, %v1296_v10 }
  0x26   : > { %1029 = vset.pattern.permute.xlu0 %v1155_v11 }
  0x27   : > { %688 = vperm.xlu0 %1029, %v1306_v12  }
  0x2f   : > { %1030 = vset.pattern.permute.xlu0 %v1154_v3 }
  0x88   : > { %v376_v13 = vpop.permute.xlu0 %375  ;;  %v371_v19 = vpop.permute.xlu1 %370 }
  0x90   : > { %v366_v14 = vpop.permute.xlu0 %365 }
  0x9c   : > { %v406_v15 = vpop.f32.mrf.mxu0 }
  0x9d   : > { %v407_v16 = vadd.f32 %v406_v15, %v366_v14  ;;  %v659_v14 = vld [vmem:[%s1438_s4 + $0x8] sm:$0xff] }
  0x9f   : > { %v946_v17 = vmul.f32 -1.442695, %v407_v16 }
  0xa1   : > { %1050 = vpow2.f32 %v946_v17 }
  0xa2   : > { %v411_v18 = vpop.f32.mrf.mxu3 }
  0xa3   : > { %v412_v20 = vadd.f32 %v411_v18, %v376_v13  ;;  %v1158_v13 = vmov 2  }
  0xa4   : > { %v408_v21 = vpop.f32.mrf.mxu0 }
  0xa5   : > { %v948_v22 = vmul.f32 -1.442695, %v412_v20  ;;  %v409_v23 = vadd.f32 %v408_v21, %v371_v19 }
  0xa7   : > { %v1051_v24 = vpop.eup %1050  ;;  %1052 = vpow2.f32 %v948_v22  ;;  %v947_v25 = vmul.f32 -1.442695, %v409_v23  ;;  %v689_v22 = vpop.permute.xlu0 %688 }
  0xa8   : > { %v424_v26 = vadd.f32 1.0, %v1051_v24 }
  0xa9   : > { %1054 = vpow2.f32 %v947_v25  ;;  %v715_v25 = vld [vmem:[%s1439_s5] sm:$0xff] }
  0xaa   : > { %1056 = vrcp.f32 %v424_v26  ;;  %v413_v27 = vpop.f32.mrf.mxu3  ;;  %v438_v35 = vand.u32 2147483648, %v424_v26  ;;  %vm432_vm2 = vweird.f32 %v424_v26  ;;  %v436_v37 = vand.u32 2147483647, %v424_v26 }
  0xab   : > { %v799_v27 = vld [vmem:[%s1441_s7] sm:$0xf] }
  0xac   : > { %v439_v41 = vor.u32 1.1754944e-38, %v438_v35  ;;  %vm437_vm5 = vcmp.eq.f32.partialorder %v436_v37, 8.507059e+37 }
  0xad   : > { %v1053_v28 = vpop.eup %1052 }
  0xae   : > { %v426_v29 = vadd.f32 1.0, %v1053_v28 }
  0xaf   : > { %v1055_v30 = vpop.eup %1054 }
  0xb0   : > { %v1057_v31 = vpop.eup %1056  ;;  %1058 = vrcp.f32 %v426_v29  ;;  %v425_v33 = vadd.f32 1.0, %v1055_v30  ;;  %v466_v46 = vand.u32 2147483647, %v426_v29  ;;  %v468_v47 = vand.u32 2147483648, %v426_v29 }
  0xb1   : > { %v428_v32 = vmul.f32 %v1057_v31, %v424_v26  ;;  %vm433_vm3 = vweird.f32 %v1057_v31  ;;  %vm462_vm9 = vweird.f32 %v426_v29  ;;  %v716_v26 = vld [vmem:[%s1439_s5 + $0x8] sm:$0xff] }
  0xb2   : > { %1060 = vrcp.f32 %v425_v33  ;;  %vm434_vm4 = vmor %vm432_vm2, %vm433_vm3  ;;  %v453_v51 = vand.u32 2147483648, %v425_v33  ;;  %vm447_vm7 = vweird.f32 %v425_v33  ;;  %v451_v53 = vand.u32 2147483647, %v425_v33 }
  0xb3   : > { %v429_v34 = vsub.f32 1.0, %v428_v32  ;;  %v469_v55 = vor.u32 1.1754944e-38, %v468_v47  ;;  %vm467_vm11 = vcmp.eq.f32.partialorder %v466_v46, 8.507059e+37 }
  0xb4   : > { %v454_v58 = vor.u32 1.1754944e-38, %v453_v51  ;;  %vm452_vm13 = vcmp.eq.f32.partialorder %v451_v53, 8.507059e+37 }
  0xb5   : > { %v430_v36 = vmul.f32 %v1057_v31, %v429_v34 }
  0xb6   : > { %v1059_v38 = vpop.eup %1058 }
  0xb7   : > { %v431_v39 = vadd.f32 %v1057_v31, %v430_v36  ;;  %v458_v40 = vmul.f32 %v1059_v38, %v426_v29  ;;  %vm463_vm6 = vweird.f32 %v1059_v38 }
  0xb8   : > { %v1061_v42 = vpop.eup %1060  ;;  %vm464_vm10 = vmor %vm462_vm9, %vm463_vm6 }
  0xb9   : > { %v435_v43 = vsel %vm434_vm4, %v1057_v31, %v431_v39  ;;  %v459_v44 = vsub.f32 1.0, %v458_v40  ;;  %v443_v48 = vmul.f32 %v1061_v42, %v425_v33  ;;  %vm448_vm8 = vweird.f32 %v1061_v42 }
  0xba   : > { %v440_v45 = vsel %vm437_vm5, %v439_v41, %v435_v43  ;;  %vm449_vm12 = vmor %vm447_vm7, %vm448_vm8  ;;  %v574_v39 = vlaneseq  ;;  %vm809_vm8 = vcmask 1043456  }
  0xbb   : > { %v1311_v49 = vmul.f32 %v440_v45, %v407_v16  ;;  %v460_v50 = vmul.f32 %v1059_v38, %v459_v44  ;;  %v444_v52 = vsub.f32 1.0, %v443_v48 }
  0xbc   : > { %v575_v40 = vand.u32 127, %v574_v39 }
  0xbd   : > { %v461_v54 = vadd.f32 %v1059_v38, %v460_v50  ;;  %577 = vrot.lane.b32.xlu2 %v1311_v49, %s1156_s25  ;;  %v445_v56 = vmul.f32 %v1061_v42, %v444_v52 }
  0xbe   : > { %vm595_vm15 = vcmp.eq.s32.totalorder %v575_v40, 0  ;;  %vm628_vm2 = vcmp.eq.s32.totalorder %v575_v40, 15 }
  0xbf   : > { %v465_v57 = vsel %vm464_vm10, %v1059_v38, %v461_v54  ;;  %v446_v60 = vadd.f32 %v1061_v42, %v445_v56 }
  0xc0   : > { %v470_v59 = vsel %vm467_vm11, %v469_v55, %v465_v57 }
  0xc1   : > { %v1315_v61 = vmul.f32 %v470_v59, %v412_v20  ;;  %v450_v62 = vsel %vm449_vm12, %v1061_v42, %v446_v60 }
  0xc2   : > { %v455_v63 = vsel %vm452_vm13, %v454_v58, %v450_v62 }
  0xc3   : > { %583 = vrot.lane.b32.xlu1 %v1315_v61, %s1156_s25  ;;  %v1319_v0 = vmul.f32 %v455_v63, %v409_v23  ;;  %v693_v51 = vmul.f32 %v689_v22, %v1315_v61 }
  0xc5   : > { %580 = vrot.lane.b32.xlu2 %v1319_v0, %s1156_s25 }
  0xcd   : > { %673 = vperm.xlu2 %1028, %v1306_v12  }
  0xd5   : > { %605 = vperm.xlu2 %1028, %v1157_v1  }
 0x117   : > { %v578_v2 = vpop.permute.xlu2 %577 }
 0x118   : > { %v579_v4 = vsel %vm576_vm14, %v578_v2, %v1311_v49 }
 0x119   : > { %586 = vrot.lane.b32.xlu1 %v579_v4, %s1156_s25 }
 0x11f   : > { %v581_v6 = vpop.permute.xlu2 %580 }
 0x120   : > { %v582_v7 = vsel %vm576_vm14, %v581_v6, %v1319_v0 }
 0x121   : > { %1038 = vperm.xlu1 %1036, %v1157_v1   ;;  %588 = vrot.lane.b32.xlu2 %v582_v7, %s1156_s25 }
 0x129   : > { %1042 = vset.pattern.permute.xlu1 %v1158_v13  ;;  %663 = vperm.xlu2 %1028, %v658_v8  }
 0x12a   : > { %706 = vperm.xlu1 %1042, %v1306_v12   ;;  %v674_v12 = vpop.permute.xlu2 %673 }
 0x131   : > { %1044 = vset.pattern.permute.xlu2 %v1155_v11 }
 0x132   : > { %1043 = vset.pattern.permute.xlu1 %v1155_v11  ;;  %684 = vperm.xlu2 %1044, %v659_v14   ;;  %v717_v11 = vld [vmem:[%s1439_s5 + $0x10] sm:$0xff]  ;;  %v1346_v17 = vpop.permute.xlu2 %605 }
 0x133   : > { %680 = vperm.xlu1 %1043, %v658_v8  }
 0x135   : > { %v584_v15 = vpop.permute.xlu1 %583 }
 0x136   : > { %v585_v16 = vsel %vm576_vm14, %v584_v15, %v1315_v61 }
 0x137   : > { %590 = vrot.lane.b32.xlu0 %v585_v16, %s1156_s25  ;;  %s959_s25 = sshll.u32 %s1144_s30, 2 }
 0x138   : > { %s841_s14 = scalar_lea.hbm %s1442_s8, %s959_s25 }
 0x139   : > { %s845_s20 = sshll.u32 %s841_s14, 4  ;;  %s846_s20 = int_to_ptr.hbm [resolvable:$true] %s845_s20 }
 0x13a   : > { %1046 = vset.pattern.permute.xlu2 %v1158_v13  ;;  %s1088_s23 = sshra.s32 %s846_s20, 4  ;;  %s1089_s23 = int_to_ptr.hbm [resolvable:$true] %s1088_s23 }
 0x13b   : > { %638 = vperm.xlu1 %1043, %v1157_v1   ;;  %s1090_s30 = scalar_lea.hbm %s1089_s23, 4  ;;  %p1095_p1 = scmp.lt.s32.totalorder %s1089_s23, %s1442_s8 }
 0x13c   : > { %p1091_p12 = scmp.ne.s32.totalorder %s1089_s23, %s1090_s30 }
 0x13e   : > { %p1092_p13 = pnand %p1091_p12, %p1246_p4 }
 0x13f   : > { %1032 = vperm.xlu0 %1030, %v1157_v1  }
 0x140   : > { %p1093_p0 = pneg %p1092_p13 }
 0x143   : > { %1045 = vset.pattern.permute.xlu1 %v1154_v3 }
 0x144   : > { %730 = vperm.xlu1 %1045, %v717_v11  }
 0x147   : > { %668 = vperm.xlu0 %1030, %v659_v14  }
 0x14f   : > { %1047 = vset.pattern.permute.xlu0 %v1158_v13 }
 0x17b   : > { %v589_v20 = vpop.permute.xlu2 %588 }
 0x17c   : > { %v593_v21 = vsel %vm576_vm14, %v589_v20, %v1319_v0 }
 0x183   : > { %v664_v30 = vpop.permute.xlu2 %663 }
 0x18b   : > { %v587_v18 = vpop.permute.xlu1 %586 }
 0x18c   : > { %v592_v19 = vsel %vm576_vm14, %v587_v18, %v1311_v49  ;;  %v685_v33 = vpop.permute.xlu2 %684 }
 0x18d   : > { %616 = vrot.lane.b32.xlu0 %v592_v19, %s1159_s21  ;;  %646 = vrot.lane.b32.xlu2 %v592_v19, %s1160_s22  ;;  %v692_v2 = vmul.f32 %v685_v33, %v1319_v0 }
 0x193   : > { %v1039_v28 = vpop.permute.xlu1 %1038 }
 0x194   : > { %v1040_v42 = vunpack.i.l.bf16 %v1039_v28  ;;  %v1041_v57 = vunpack.i.h.bf16 %v1039_v28 }
 0x195   : > { %648 = vrot.lane.b32.xlu0 %v593_v21, %s1160_s22 }
 0x19c   : > { %v707_v29 = vpop.permute.xlu1 %706 }
 0x19d   : > { %702 = vperm.xlu0 %1047, %v659_v14  }
 0x1a5   : > { %1049 = vset.pattern.permute.xlu0 %v1154_v3  ;;  %v681_v32 = vpop.permute.xlu1 %680 }
 0x1a9   : > { %v591_v23 = vpop.permute.xlu0 %590 }
 0x1aa   : > { %v594_v24 = vsel %vm576_vm14, %v591_v23, %v1315_v61  ;;  %vm805_vm14 = vcmask 195584  }
 0x1ab   : > { %620 = vrot.lane.b32.xlu1 %v594_v24, %s1159_s21  ;;  %650 = vrot.lane.b32.xlu2 %v594_v24, %s1160_s22  ;;  %s337_s22 = sand.u32 1, %s1136_s28  }
 0x1ac   : > { %s937_s24 = sshll.u32 %s337_s22, 2 }
 0x1ad   : > { %v639_v35 = vpop.permute.xlu1 %638  ;;  %s339_s16 = scalar_lea.vmem [#allocation2], %s937_s24  ;;  %s1094_s24 = scalar_lea.hbm %s1442_s8, 8 }
 0x1ae   : > { %s843_s19 = sshll.u32 %s339_s16, 4  ;;  %p1096_p2 = scmp.lt.s32.totalorder %s1094_s24, %s1090_s30  ;;  %s844_s19 = int_to_ptr.vmem [resolvable:$true] %s843_s19 }
 0x1b0   : > { %p1097_p3 = por %p1096_p2, %p1095_p1 }
 0x1b1   : > { %v1033_v31 = vpop.permute.xlu0 %1032 }
 0x1b2   : > { %v1034_v43 = vunpack.i.l.bf16 %v1033_v31  ;;  %v1035_v52 = vunpack.i.h.bf16 %v1033_v31  ;;  %p1098_p5 = pnand %p1097_p3, %p1093_p0 }
 0x1b3   : > { %698 = vperm.xlu2 %1046, %v658_v8   ;;  %618 = vrot.lane.b32.xlu1 %v593_v21, %s1159_s21  ;;  %s353_s21 = scalar_lea.vmem %s1435_s1, %s938_s26 }
 0x1b4   : > { %v475_v41 = vld [vmem:[%s353_s21] sm:$0xf]  ;;  %s830_s21 = scalar_lea.sflag [#allocation3], %s337_s22 }
 0x1b5   : > { %v476_v45 = vpack.c.bf16 %v475_v41, %v475_v41 }
 0x1b6   : > { %v731_v38 = vpop.permute.xlu1 %730 }
 0x1b7   : > { %v478_v50 = vsel %vm393_vm0, %v476_v45, 0 }
 0x1b8   : > { %487 = vmatpush.bf16.msra.mxu1 %v478_v50 }
 0x1b9   : > { %v669_v34 = vpop.permute.xlu0 %668 }
 0x1bb   : > { %720 = vperm.xlu1 %1045, %v715_v25   ;;  %1048 = vset.pattern.permute.xlu2 %v1154_v3 }
 0x1bc   : > { %725 = vperm.xlu2 %1048, %v716_v26   ;;  %949 = vmatmul.msk.bf16.vlgmr.msra.gmra.mxu1 %vm386_vm1, %v1294_v9  ;;  %v691_v9 = vmul.f32 %v681_v32, %v1311_v49 }
 0x1c3   : > { %802 = vperm.xlu1 %1045, %v799_v27  }
 0x1cc   : > { %950 = vmatmul.msk.bf16.gmra.mxu1 %vm386_vm1, %v1296_v10 }
 0x1e7   : > { %v647_v36 = vpop.permute.xlu2 %646 }
 0x1e8   : > { %v655_v4 = vsel %vm628_vm2, %v1041_v57, %v647_v36 }
 0x1ff   : > { %v617_v37 = vpop.permute.xlu0 %616 }
 0x200   : > { %v625_v58 = vsel %vm595_vm15, %v1035_v52, %v617_v37 }
 0x201   : > { %v676_v63 = vmul.f32 %v664_v30, %v625_v58 }
 0x205   : > { %v651_v3 = vpop.permute.xlu2 %650 }
 0x206   : > { %v657_v47 = vsel %vm628_vm2, %v1040_v42, %v651_v3 }
 0x207   : > { %v649_v44 = vpop.permute.xlu0 %648  ;;  %v711_v54 = vmul.f32 %v707_v29, %v657_v47 }
 0x208   : > { %v656_v13 = vsel %vm628_vm2, %v639_v35, %v649_v44 }
 0x20d   : > { %v699_v56 = vpop.permute.xlu2 %698 }
 0x20e   : > { %v709_v8 = vmul.f32 %v699_v56, %v655_v4 }
 0x20f   : > { %v703_v1 = vpop.permute.xlu0 %702 }
 0x210   : > { %v710_v14 = vmul.f32 %v703_v1, %v656_v13 }
 0x216   : > { %v726_v16 = vpop.permute.xlu2 %725 }
 0x21d   : > { %v621_v46 = vpop.permute.xlu1 %620 }
 0x21e   : > { %v627_v48 = vsel %vm595_vm15, %v1034_v43, %v621_v46 }
 0x21f   : > { %v678_v53 = vmul.f32 %v674_v12, %v627_v48  ;;  %v694_v12 = vadd.f32 %v691_v9, %v676_v63  ;;  %v796_v63 = vld [vmem:[%s1440_s6] sm:$0x3] }
 0x221   : > { %v696_v55 = vadd.f32 %v693_v51, %v678_v53  ;;  %v712_v18 = vadd.f32 %v709_v8, %v694_v12 }
 0x223   : > { %v714_v59 = vadd.f32 %v711_v54, %v696_v55 }
 0x225   : > { %v619_v60 = vpop.permute.xlu1 %618  ;;  %v1377_v62 = vadd.f32 %v731_v38, %v714_v59 }
 0x226   : > { %v626_v61 = vsel %vm595_vm15, %v1346_v17, %v619_v60  ;;  %vm827_vm15 = vcmask 125952  }
 0x227   : > { %v677_v6 = vmul.f32 %v669_v34, %v626_v61  ;;  %v956_v7 = vmul.f32 -1.442695, %v1377_v62 }
 0x229   : > { %v695_v15 = vadd.f32 %v692_v2, %v677_v6  ;;  %1062 = vpow2.f32 %v956_v7 }
 0x22b   : > { %v713_v11 = vadd.f32 %v710_v14, %v695_v15 }
 0x22d   : > { %v734_v17 = vadd.f32 %v726_v16, %v713_v11  ;;  %v721_v19 = vpop.permute.xlu1 %720 }
 0x22e   : > { %v1386_v0 = vadd.f32 %v721_v19, %v712_v18 }
 0x22f   : > { %v1063_v20 = vpop.eup %1062  ;;  %v955_v21 = vmul.f32 -1.442695, %v734_v17 }
 0x230   : > { %v954_v22 = vmul.f32 -1.442695, %v1386_v0  ;;  %v747_v23 = vadd.f32 1.0, %v1063_v20 }
 0x231   : > { %1064 = vpow2.f32 %v955_v21 }
 0x232   : > { %1066 = vpow2.f32 %v954_v22  ;;  %v787_v30 = vand.u32 2147483647, %v747_v23  ;;  %v789_v31 = vand.u32 2147483648, %v747_v23  ;;  %vm783_vm1 = vweird.f32 %v747_v23 }
 0x233   : > { %1068 = vrcp.f32 %v747_v23 }
 0x234   : > { %vm788_vm4 = vcmp.eq.f32.partialorder %v787_v30, 8.507059e+37  ;;  %v790_v38 = vor.u32 1.1754944e-38, %v789_v31 }
 0x235   : > { %v803_v6 = vpop.permute.xlu1 %802 }
 0x237   : > { %v1065_v49 = vpop.eup %1064 }
 0x238   : > { %v1067_v24 = vpop.eup %1066  ;;  %v746_v25 = vadd.f32 1.0, %v1065_v49 }
 0x239   : > { %v1069_v26 = vpop.eup %1068  ;;  %v745_v27 = vadd.f32 1.0, %v1067_v24  ;;  %v489_v1 = vpop.f32.mrf.mxu1 }
 0x23a   : > { %1070 = vrcp.f32 %v746_v25  ;;  %v779_v28 = vmul.f32 %v1069_v26, %v747_v23  ;;  %vm784_vm0 = vweird.f32 %v1069_v26  ;;  %v772_v39 = vand.u32 2147483647, %v746_v25 }
 0x23b   : > { %1072 = vrcp.f32 %v745_v27  ;;  %vm785_vm3 = vmor %vm783_vm1, %vm784_vm0  ;;  %v774_v3 = vand.u32 2147483648, %v746_v25  ;;  %v759_v43 = vand.u32 2147483648, %v745_v27  ;;  %v757_v46 = vand.u32 2147483647, %v745_v27 }
 0x23c   : > { %v780_v29 = vsub.f32 1.0, %v779_v28  ;;  %vm768_vm7 = vweird.f32 %v746_v25  ;;  %vm753_vm10 = vweird.f32 %v745_v27  ;;  %vm773_vm11 = vcmp.eq.f32.partialorder %v772_v39, 8.507059e+37 }
 0x23d   : > { %v775_v50 = vor.u32 1.1754944e-38, %v774_v3  ;;  %v760_v54 = vor.u32 1.1754944e-38, %v759_v43  ;;  %vm758_vm13 = vcmp.eq.f32.partialorder %v757_v46, 8.507059e+37 }
 0x23e   : > { %v781_v33 = vmul.f32 %v1069_v26, %v780_v29 }
 0x240   : > { %v1071_v32 = vpop.eup %1070  ;;  %v782_v37 = vadd.f32 %v1069_v26, %v781_v33 }
 0x241   : > { %v1073_v34 = vpop.eup %1072  ;;  %v764_v35 = vmul.f32 %v1071_v32, %v746_v25  ;;  %vm769_vm5 = vweird.f32 %v1071_v32  ;;  %v491_v61 = vpop.f32.mrf.mxu1 }
 0x242   : > { %v749_v36 = vmul.f32 %v1073_v34, %v745_v27  ;;  %v786_v41 = vsel %vm785_vm3, %v1069_v26, %v782_v37  ;;  %vm754_vm6 = vweird.f32 %v1073_v34  ;;  %vm770_vm9 = vmor %vm768_vm7, %vm769_vm5 }
 0x243   : > { %v765_v10 = vsub.f32 1.0, %v764_v35  ;;  %v791_v44 = vsel %vm788_vm4, %v790_v38, %v786_v41  ;;  %vm755_vm12 = vmor %vm753_vm10, %vm754_vm6 }
 0x244   : > { %v750_v40 = vsub.f32 1.0, %v749_v36  ;;  %v795_v47 = vmul.f32 %v791_v44, %v1377_v62 }
 0x245   : > { %v766_v42 = vmul.f32 %v1071_v32, %v765_v10 }
 0x246   : > { %v751_v45 = vmul.f32 %v1073_v34, %v750_v40  ;;  %v798_v52 = vpack.c.bf16 %v795_v47, %v795_v47 }
 0x247   : > { %v767_v48 = vadd.f32 %v1071_v32, %v766_v42 }
 0x248   : > { %v752_v51 = vadd.f32 %v1073_v34, %v751_v45  ;;  %v811_v57 = vsel %vm809_vm8, %v798_v52, 0 }
 0x249   : > { %v771_v53 = vsel %vm770_vm9, %v1071_v32, %v767_v48  ;;  %819 = vmatpush.bf16.msra.mxu2 %v811_v57  ;;  %v494_v2 = vpop.f32.mrf.mxu1 }
 0x24a   : > { %v776_v55 = vsel %vm773_vm11, %v775_v50, %v771_v53  ;;  %v756_v56 = vsel %vm755_vm12, %v1073_v34, %v752_v51 }
 0x24b   : > { %v794_v58 = vmul.f32 %v776_v55, %v734_v17  ;;  %v761_v59 = vsel %vm758_vm13, %v760_v54, %v756_v56 }
 0x24c   : > { %v793_v60 = vmul.f32 %v761_v59, %v1386_v0 }
 0x24e   : > { %v797_v62 = vpack.c.bf16 %v794_v58, %v793_v60 }
 0x250   : > { %820 = vmatpush.bf16.msra.mxu2 %v797_v62 }
 0x251   : > { %v496_v4 = vpop.f32.mrf.mxu1 }
 0x253   : > { %957 = vmatmul.msk.bf16.vlgmr.msra.gmra.mxu2 %vm805_vm14, %v796_v63 }
 0x2d6   : > { %v822_v7 = vpop.f32.mrf.mxu2 }
 0x2d7   : > { %v823_v9 = vadd.f32 %v822_v7, %v803_v6 }
 0x2d9   : > { %v826_v8 = vadd.f32 %v823_v9, %v1283_v5 }
 0x2db   : > { %828 = vst.msk [vmem:[%s339_s16] sm:$0xf] %vm827_vm15, %v826_v8 }
 0x2dc   : > { %1101 = shalt.err (!%p1098_p5)
}
 0x2dd   : > { %964 = dma.vmem_to_hbm [thread:$0]  (%p1246_p4), %s844_s19, 64, %s846_s20, %s830_s21  }
 0x2de   : > { %v824_v5 = vpop.f32.mrf.mxu2 }
 0x2df PF: > { %p970_p6 = scmp.ge.s32.totalorder %s1152_s10, 2  ;;  %s857_s22 = sand.u32 1, %s1132_s27  }
 0x2e0   : > { %s858_s14 = scalar_lea.sflag [#allocation3], %s857_s22 }
 0x2e1   : > { %p967_p7 = pnand %p970_p6, %p1253_p8 }
 0x2e3   : > { %p968_p9 = pneg %p967_p7 }
 0x2e5   : > { %1127 = dma.done.wait (%p968_p9), %s858_s14, 64  }
 0x2e6   : > { %1129 = vsyncadd (%p968_p9), %s858_s14, 4294967232  ;;  %s21_s10 = sadd.s32 1, %s1152_s10   ;;  %s1445_s27 = smov %s1136_s28 }
 0x2e7   : > { %p18_p10 = scmp.ge.s32.totalorder %s21_s10, 4   ;;  %s1446_s28 = smov %s1140_s29 }
 0x2e8   : > { %s1447_s29 = smov %s1259_s18  ;;  %s1448_s30 = smov %s1148_s9 }
 0x2e9   : > { %s1449_s9 = smov %s1451_s13  ;;  %20 = sbr.rel (!%p18_p10) target bundleno = 4 (0x4), region = 90 }
 0x2ee   :  { %864 = vsyncpa [#allocation3], 1 }
 0x2ef   :  { %866 = vsyncpa [#allocation3 + $0x1], 1 }

</bundles_post_ra>
